<compile_context>
chip_gen: v7x
topology: tpu7x:2x2x1
jax: 0.10.0
libtpu: 0.0.40
codegen_flags: <defaults>
</compile_context>

<pallas_src>
import functools

import jax
import jax.numpy as jnp
from jax import lax
from jax.experimental import pallas as pl
from jax.experimental.pallas import tpu as pltpu


def _round_up(x, m):
    return ((x + m - 1) // m) * m


def _cdiv(a, b):
    return (a + b - 1) // b


def ddqn_kernel(x_ref, w1_ref, b1_ref, w2_ref, b2_ref, w3_ref, b3_ref, o_ref,
                *, in_size, hidden, action_size, chunk):
    """x_ref: (in_size, TILE_B) VMEM, o_ref: (8, TILE_B) VMEM, weights in SMEM."""
    tile_b = x_ref.shape[1]
    out_sub = o_ref.shape[0]
    n_chunks = tile_b // chunk

    # Zero the padded output sublane rows once per grid step (they are sliced
    # off by the wrapper but must not be left uninitialized).
    if out_sub > action_size:
        o_ref[action_size:, :] = jnp.zeros(
            (out_sub - action_size, tile_b), jnp.float32)

    def body(c, carry):
        off = pl.multiple_of(c * chunk, chunk)
        lanes = pl.ds(off, chunk)

        # fc1 + tanh: h1[j, :] = tanh(sum_k W1[k, j] * x[k, :] + b1[j])
        h1 = []
        for j in range(hidden):
            acc = x_ref[pl.ds(0, 1), lanes] * w1_ref[j]
            for k in range(1, in_size):
                acc = acc + x_ref[pl.ds(k, 1), lanes] * w1_ref[k * hidden + j]
            h1.append(jnp.tanh(acc + b1_ref[j]))

        # fc2 + tanh
        h2 = []
        for j in range(hidden):
            acc = h1[0] * w2_ref[j]
            for k in range(1, hidden):
                acc = acc + h1[k] * w2_ref[k * hidden + j]
            h2.append(jnp.tanh(acc + b2_ref[j]))

        # fc3_pi (no activation) — each Q row stored lane-dense.
        for a in range(action_size):
            acc = h2[0] * w3_ref[a]
            for k in range(1, hidden):
                acc = acc + h2[k] * w3_ref[k * action_size + a]
            o_ref[pl.ds(a, 1), lanes] = acc + b3_ref[a]

        return carry

    lax.fori_loop(0, n_chunks, body, 0)


def prepare_ddqn_params(params):
    """One-time parameter massaging (hoisted out of the per-call path).

    `params` holds weights already transposed to (in, out); returns flat f32
    vectors suitable for SMEM residency (1-D avoids the 2-D SMEM padding
    blow-up)."""
    in_size, hidden = params["w1"].shape
    action_size = params["w3"].shape[1]
    return {
        "w1": jnp.asarray(params["w1"], jnp.float32).reshape(-1),
        "b1": jnp.asarray(params["b1"], jnp.float32).reshape(-1),
        "w2": jnp.asarray(params["w2"], jnp.float32).reshape(-1),
        "b2": jnp.asarray(params["b2"], jnp.float32).reshape(-1),
        "w3": jnp.asarray(params["w3"], jnp.float32).reshape(-1),
        "b3": jnp.asarray(params["b3"], jnp.float32).reshape(-1),
        "in_size": in_size,
        "hidden": hidden,
        "action_size": action_size,
    }


def ddqn_forward(x, prep, tile_b=8192, chunk=512):
    """x: (B, input_size) f32 -> (B, action_size) f32 (matches DDQN.forward).

    tile_b: lane tile cap. With the transposed layout the per-tile VMEM
    footprint is tiny ((4+8)*tile*4B double-buffered), so 8K-64K is safe on
    all generations; larger tiles amortize the ~0.35 us per-step overhead.
    """
    B, in_size = x.shape
    hidden = prep["hidden"]
    action_size = prep["action_size"]
    assert in_size == prep["in_size"]
    out_sub = _round_up(max(action_size, 1), 8)

    # ---- lane-tile selection (derived from B to cap padding waste) --------
    b128 = _round_up(B, 128)
    tile_cap = max(128, _round_up(tile_b, 128))
    n_steps = _cdiv(b128, tile_cap)
    # v7x has 2 TensorCores: give the "parallel" grid >= 2 steps whenever
    # there are at least two lane-tiles of work.
    if n_steps < 2 and b128 >= 256:
        n_steps = 2
    tile = _round_up(_cdiv(b128, n_steps), 128)
    b_pad = _round_up(b128, tile)

    chunk = max(128, (min(chunk, tile) // 128) * 128)
    if tile % chunk != 0:
        chunk = 128

    # ---- per-call input massaging (small XLA ops; interface-preserving) ---
    xt = jnp.asarray(x, jnp.float32).T            # (in_size, B)
    if b_pad != B:
        xt = jnp.pad(xt, ((0, 0), (0, b_pad - B)))

    kernel = functools.partial(
        ddqn_kernel, in_size=in_size, hidden=hidden,
        action_size=action_size, chunk=chunk)

    smem_spec = pl.BlockSpec(memory_space=pltpu.MemorySpace.SMEM)

    out = pl.pallas_call(
        kernel,
        out_shape=jax.ShapeDtypeStruct((out_sub, b_pad), jnp.float32),
        grid=(b_pad // tile,),
        in_specs=[
            pl.BlockSpec((in_size, tile), lambda i: (0, i)),  # x^T lane-tiled
            smem_spec, smem_spec,                             # w1, b1
            smem_spec, smem_spec,                             # w2, b2
            smem_spec, smem_spec,                             # w3, b3
        ],
        out_specs=pl.BlockSpec((out_sub, tile), lambda i: (0, i)),
        compiler_params=pltpu.CompilerParams(
            dimension_semantics=("parallel",)),
    )(
        xt,
        prep["w1"], prep["b1"],
        prep["w2"], prep["b2"],
        prep["w3"], prep["b3"],
    )

    # Back to the PyTorch interface: (B, action_size).
    return out[:action_size, :B].T


def init_ddqn_params(key, action_size=3, input_size=4, hidden_size=3):
    """Deterministic synthetic init (same shapes as the PyTorch module).

    Mimics nn.Linear default init but stores weights transposed to (in, out)."""
    def linear(key, fan_in, fan_out):
        kw, kb = jax.random.split(key)
        bound = 1.0 / jnp.sqrt(jnp.float32(fan_in))
        w = jax.random.uniform(kw, (fan_in, fan_out), jnp.float32, -bound, bound)
        b = jax.random.uniform(kb, (1, fan_out), jnp.float32, -bound, bound)
        return w, b

    k1, k2, k3 = jax.random.split(key, 3)
    w1, b1 = linear(k1, input_size, hidden_size)
    w2, b2 = linear(k2, hidden_size, hidden_size)
    w3, b3 = linear(k3, hidden_size, action_size)
    return {"w1": w1, "b1": b1, "w2": w2, "b2": b2, "w3": w3, "b3": b3}


def ddqn_reference(x, p):
    hi = jax.lax.Precision.HIGHEST
    h1 = jnp.tanh(jnp.dot(x, p["w1"], precision=hi) + p["b1"])
    h2 = jnp.tanh(jnp.dot(h1, p["w2"], precision=hi) + p["b2"])
    return jnp.dot(h2, p["w3"], precision=hi) + p["b3"]


if __name__ == "__main__":
    key = jax.random.PRNGKey(0)
    kx, kp = jax.random.split(key)

    batch = 8
    input_size = 4
    action_size = 3

    x = jax.random.normal(kx, (batch, input_size), jnp.float32)
    params = init_ddqn_params(kp, action_size=action_size, input_size=input_size)
    prep = prepare_ddqn_params(params)   # hoisted, one-time massaging

    out = ddqn_forward(x, prep)
    out = jax.block_until_ready(out)

    ref = ddqn_reference(x, params)
    assert out.shape == (batch, action_size)
    assert jnp.allclose(out, ref, atol=1e-5, rtol=1e-5), "mismatch vs reference"

    print("KERNEL_OK")
</pallas_src>

<mosaic_0001>
module attributes {stable_mosaic.version = 11 : i64} {
  func.func @ddqn_kernel(%arg0: i32, %arg1: memref<4x128xf32, #tpu.memory_space<vmem>>, %arg2: memref<12xf32, #tpu.memory_space<smem>>, %arg3: memref<3xf32, #tpu.memory_space<smem>>, %arg4: memref<9xf32, #tpu.memory_space<smem>>, %arg5: memref<3xf32, #tpu.memory_space<smem>>, %arg6: memref<9xf32, #tpu.memory_space<smem>>, %arg7: memref<3xf32, #tpu.memory_space<smem>>, %arg8: memref<8x128xf32, #tpu.memory_space<vmem>>) attributes {dimension_semantics = [#tpu.dimension_semantics<parallel>], iteration_bounds = array<i64: 1>, scalar_prefetch = 0 : i64, scratch_operands = 0 : i64, tpu.core_type = #tpu.core_type<tc>, window_params = [{transform_indices = @transform_0, window_bounds = array<i64: 4, 128>}, {transform_indices = @transform_1, window_bounds = array<i64: 12>}, {transform_indices = @transform_2, window_bounds = array<i64: 3>}, {transform_indices = @transform_3, window_bounds = array<i64: 9>}, {transform_indices = @transform_4, window_bounds = array<i64: 3>}, {transform_indices = @transform_5, window_bounds = array<i64: 9>}, {transform_indices = @transform_6, window_bounds = array<i64: 3>}, {transform_indices = @transform_7, window_bounds = array<i64: 8, 128>}]} {
    %cst = arith.constant 0.000000e+00 : f32
    %0 = vector.broadcast %cst : f32 to vector<5x128xf32>
    %c3 = arith.constant 3 : index
    %c0 = arith.constant 0 : index
    %1 = vector.load %arg8[%c3, %c0] : memref<8x128xf32, #tpu.memory_space<vmem>>, vector<5x128xf32>
    tpu.vector_store %arg8[%c3, %c0], %0 {strides = array<i32>} : memref<8x128xf32, #tpu.memory_space<vmem>>, vector<5x128xf32>,
    %c0_i32 = arith.constant 0 : i32
    %c128_i32 = arith.constant 128 : i32
    %2 = arith.muli %c0_i32, %c128_i32 : i32
    %3 = tpu.assume_multiple %2, 128 : i32
    %c0_0 = arith.constant 0 : index
    %4 = arith.index_cast %3 : i32 to index
    %5 = vector.load %arg1[%c0_0, %4] : memref<4x128xf32, #tpu.memory_space<vmem>>, vector<1x128xf32>
    %c0_1 = arith.constant 0 : index
    %6 = memref.load %arg2[%c0_1] : memref<12xf32, #tpu.memory_space<smem>>
    %7 = vector.broadcast %6 : f32 to vector<1x128xf32>
    %8 = arith.mulf %5, %7 : vector<1x128xf32>
    %c1 = arith.constant 1 : index
    %9 = arith.index_cast %3 : i32 to index
    %10 = vector.load %arg1[%c1, %9] : memref<4x128xf32, #tpu.memory_space<vmem>>, vector<1x128xf32>
    %c3_2 = arith.constant 3 : index
    %11 = memref.load %arg2[%c3_2] : memref<12xf32, #tpu.memory_space<smem>>
    %12 = vector.broadcast %11 : f32 to vector<1x128xf32>
    %13 = arith.mulf %10, %12 : vector<1x128xf32>
    %14 = arith.addf %8, %13 : vector<1x128xf32>
    %c2 = arith.constant 2 : index
    %15 = arith.index_cast %3 : i32 to index
    %16 = vector.load %arg1[%c2, %15] : memref<4x128xf32, #tpu.memory_space<vmem>>, vector<1x128xf32>
    %c6 = arith.constant 6 : index
    %17 = memref.load %arg2[%c6] : memref<12xf32, #tpu.memory_space<smem>>
    %18 = vector.broadcast %17 : f32 to vector<1x128xf32>
    %19 = arith.mulf %16, %18 : vector<1x128xf32>
    %20 = arith.addf %14, %19 : vector<1x128xf32>
    %c3_3 = arith.constant 3 : index
    %21 = arith.index_cast %3 : i32 to index
    %22 = vector.load %arg1[%c3_3, %21] : memref<4x128xf32, #tpu.memory_space<vmem>>, vector<1x128xf32>
    %c9 = arith.constant 9 : index
    %23 = memref.load %arg2[%c9] : memref<12xf32, #tpu.memory_space<smem>>
    %24 = vector.broadcast %23 : f32 to vector<1x128xf32>
    %25 = arith.mulf %22, %24 : vector<1x128xf32>
    %26 = arith.addf %20, %25 : vector<1x128xf32>
    %c0_4 = arith.constant 0 : index
    %27 = memref.load %arg3[%c0_4] : memref<3xf32, #tpu.memory_space<smem>>
    %28 = vector.broadcast %27 : f32 to vector<1x128xf32>
    %29 = arith.addf %26, %28 : vector<1x128xf32>
    %30 = math.tanh %29 : vector<1x128xf32>
    %c0_5 = arith.constant 0 : index
    %31 = arith.index_cast %3 : i32 to index
    %32 = vector.load %arg1[%c0_5, %31] : memref<4x128xf32, #tpu.memory_space<vmem>>, vector<1x128xf32>
    %c1_6 = arith.constant 1 : index
    %33 = memref.load %arg2[%c1_6] : memref<12xf32, #tpu.memory_space<smem>>
    %34 = vector.broadcast %33 : f32 to vector<1x128xf32>
    %35 = arith.mulf %32, %34 : vector<1x128xf32>
    %c1_7 = arith.constant 1 : index
    %36 = arith.index_cast %3 : i32 to index
    %37 = vector.load %arg1[%c1_7, %36] : memref<4x128xf32, #tpu.memory_space<vmem>>, vector<1x128xf32>
    %c4 = arith.constant 4 : index
    %38 = memref.load %arg2[%c4] : memref<12xf32, #tpu.memory_space<smem>>
    %39 = vector.broadcast %38 : f32 to vector<1x128xf32>
    %40 = arith.mulf %37, %39 : vector<1x128xf32>
    %41 = arith.addf %35, %40 : vector<1x128xf32>
    %c2_8 = arith.constant 2 : index
    %42 = arith.index_cast %3 : i32 to index
    %43 = vector.load %arg1[%c2_8, %42] : memref<4x128xf32, #tpu.memory_space<vmem>>, vector<1x128xf32>
    %c7 = arith.constant 7 : index
    %44 = memref.load %arg2[%c7] : memref<12xf32, #tpu.memory_space<smem>>
    %45 = vector.broadcast %44 : f32 to vector<1x128xf32>
    %46 = arith.mulf %43, %45 : vector<1x128xf32>
    %47 = arith.addf %41, %46 : vector<1x128xf32>
    %c3_9 = arith.constant 3 : index
    %48 = arith.index_cast %3 : i32 to index
    %49 = vector.load %arg1[%c3_9, %48] : memref<4x128xf32, #tpu.memory_space<vmem>>, vector<1x128xf32>
    %c10 = arith.constant 10 : index
    %50 = memref.load %arg2[%c10] : memref<12xf32, #tpu.memory_space<smem>>
    %51 = vector.broadcast %50 : f32 to vector<1x128xf32>
    %52 = arith.mulf %49, %51 : vector<1x128xf32>
    %53 = arith.addf %47, %52 : vector<1x128xf32>
    %c1_10 = arith.constant 1 : index
    %54 = memref.load %arg3[%c1_10] : memref<3xf32, #tpu.memory_space<smem>>
    %55 = vector.broadcast %54 : f32 to vector<1x128xf32>
    %56 = arith.addf %53, %55 : vector<1x128xf32>
    %57 = math.tanh %56 : vector<1x128xf32>
    %c0_11 = arith.constant 0 : index
    %58 = arith.index_cast %3 : i32 to index
    %59 = vector.load %arg1[%c0_11, %58] : memref<4x128xf32, #tpu.memory_space<vmem>>, vector<1x128xf32>
    %c2_12 = arith.constant 2 : index
    %60 = memref.load %arg2[%c2_12] : memref<12xf32, #tpu.memory_space<smem>>
    %61 = vector.broadcast %60 : f32 to vector<1x128xf32>
    %62 = arith.mulf %59, %61 : vector<1x128xf32>
    %c1_13 = arith.constant 1 : index
    %63 = arith.index_cast %3 : i32 to index
    %64 = vector.load %arg1[%c1_13, %63] : memref<4x128xf32, #tpu.memory_space<vmem>>, vector<1x128xf32>
    %c5 = arith.constant 5 : index
    %65 = memref.load %arg2[%c5] : memref<12xf32, #tpu.memory_space<smem>>
    %66 = vector.broadcast %65 : f32 to vector<1x128xf32>
    %67 = arith.mulf %64, %66 : vector<1x128xf32>
    %68 = arith.addf %62, %67 : vector<1x128xf32>
    %c2_14 = arith.constant 2 : index
    %69 = arith.index_cast %3 : i32 to index
    %70 = vector.load %arg1[%c2_14, %69] : memref<4x128xf32, #tpu.memory_space<vmem>>, vector<1x128xf32>
    %c8 = arith.constant 8 : index
    %71 = memref.load %arg2[%c8] : memref<12xf32, #tpu.memory_space<smem>>
    %72 = vector.broadcast %71 : f32 to vector<1x128xf32>
    %73 = arith.mulf %70, %72 : vector<1x128xf32>
    %74 = arith.addf %68, %73 : vector<1x128xf32>
    %c3_15 = arith.constant 3 : index
    %75 = arith.index_cast %3 : i32 to index
    %76 = vector.load %arg1[%c3_15, %75] : memref<4x128xf32, #tpu.memory_space<vmem>>, vector<1x128xf32>
    %c11 = arith.constant 11 : index
    %77 = memref.load %arg2[%c11] : memref<12xf32, #tpu.memory_space<smem>>
    %78 = vector.broadcast %77 : f32 to vector<1x128xf32>
    %79 = arith.mulf %76, %78 : vector<1x128xf32>
    %80 = arith.addf %74, %79 : vector<1x128xf32>
    %c2_16 = arith.constant 2 : index
    %81 = memref.load %arg3[%c2_16] : memref<3xf32, #tpu.memory_space<smem>>
    %82 = vector.broadcast %81 : f32 to vector<1x128xf32>
    %83 = arith.addf %80, %82 : vector<1x128xf32>
    %84 = math.tanh %83 : vector<1x128xf32>
    %c0_17 = arith.constant 0 : index
    %85 = memref.load %arg4[%c0_17] : memref<9xf32, #tpu.memory_space<smem>>
    %86 = vector.broadcast %85 : f32 to vector<1x128xf32>
    %87 = arith.mulf %30, %86 : vector<1x128xf32>
    %c3_18 = arith.constant 3 : index
    %88 = memref.load %arg4[%c3_18] : memref<9xf32, #tpu.memory_space<smem>>
    %89 = vector.broadcast %88 : f32 to vector<1x128xf32>
    %90 = arith.mulf %57, %89 : vector<1x128xf32>
    %91 = arith.addf %87, %90 : vector<1x128xf32>
    %c6_19 = arith.constant 6 : index
    %92 = memref.load %arg4[%c6_19] : memref<9xf32, #tpu.memory_space<smem>>
    %93 = vector.broadcast %92 : f32 to vector<1x128xf32>
    %94 = arith.mulf %84, %93 : vector<1x128xf32>
    %95 = arith.addf %91, %94 : vector<1x128xf32>
    %c0_20 = arith.constant 0 : index
    %96 = memref.load %arg5[%c0_20] : memref<3xf32, #tpu.memory_space<smem>>
    %97 = vector.broadcast %96 : f32 to vector<1x128xf32>
    %98 = arith.addf %95, %97 : vector<1x128xf32>
    %99 = math.tanh %98 : vector<1x128xf32>
    %c1_21 = arith.constant 1 : index
    %100 = memref.load %arg4[%c1_21] : memref<9xf32, #tpu.memory_space<smem>>
    %101 = vector.broadcast %100 : f32 to vector<1x128xf32>
    %102 = arith.mulf %30, %101 : vector<1x128xf32>
    %c4_22 = arith.constant 4 : index
    %103 = memref.load %arg4[%c4_22] : memref<9xf32, #tpu.memory_space<smem>>
    %104 = vector.broadcast %103 : f32 to vector<1x128xf32>
    %105 = arith.mulf %57, %104 : vector<1x128xf32>
    %106 = arith.addf %102, %105 : vector<1x128xf32>
    %c7_23 = arith.constant 7 : index
    %107 = memref.load %arg4[%c7_23] : memref<9xf32, #tpu.memory_space<smem>>
    %108 = vector.broadcast %107 : f32 to vector<1x128xf32>
    %109 = arith.mulf %84, %108 : vector<1x128xf32>
    %110 = arith.addf %106, %109 : vector<1x128xf32>
    %c1_24 = arith.constant 1 : index
    %111 = memref.load %arg5[%c1_24] : memref<3xf32, #tpu.memory_space<smem>>
    %112 = vector.broadcast %111 : f32 to vector<1x128xf32>
    %113 = arith.addf %110, %112 : vector<1x128xf32>
    %114 = math.tanh %113 : vector<1x128xf32>
    %c2_25 = arith.constant 2 : index
    %115 = memref.load %arg4[%c2_25] : memref<9xf32, #tpu.memory_space<smem>>
    %116 = vector.broadcast %115 : f32 to vector<1x128xf32>
    %117 = arith.mulf %30, %116 : vector<1x128xf32>
    %c5_26 = arith.constant 5 : index
    %118 = memref.load %arg4[%c5_26] : memref<9xf32, #tpu.memory_space<smem>>
    %119 = vector.broadcast %118 : f32 to vector<1x128xf32>
    %120 = arith.mulf %57, %119 : vector<1x128xf32>
    %121 = arith.addf %117, %120 : vector<1x128xf32>
    %c8_27 = arith.constant 8 : index
    %122 = memref.load %arg4[%c8_27] : memref<9xf32, #tpu.memory_space<smem>>
    %123 = vector.broadcast %122 : f32 to vector<1x128xf32>
    %124 = arith.mulf %84, %123 : vector<1x128xf32>
    %125 = arith.addf %121, %124 : vector<1x128xf32>
    %c2_28 = arith.constant 2 : index
    %126 = memref.load %arg5[%c2_28] : memref<3xf32, #tpu.memory_space<smem>>
    %127 = vector.broadcast %126 : f32 to vector<1x128xf32>
    %128 = arith.addf %125, %127 : vector<1x128xf32>
    %129 = math.tanh %128 : vector<1x128xf32>
    %c0_29 = arith.constant 0 : index
    %130 = memref.load %arg6[%c0_29] : memref<9xf32, #tpu.memory_space<smem>>
    %131 = vector.broadcast %130 : f32 to vector<1x128xf32>
    %132 = arith.mulf %99, %131 : vector<1x128xf32>
    %c3_30 = arith.constant 3 : index
    %133 = memref.load %arg6[%c3_30] : memref<9xf32, #tpu.memory_space<smem>>
    %134 = vector.broadcast %133 : f32 to vector<1x128xf32>
    %135 = arith.mulf %114, %134 : vector<1x128xf32>
    %136 = arith.addf %132, %135 : vector<1x128xf32>
    %c6_31 = arith.constant 6 : index
    %137 = memref.load %arg6[%c6_31] : memref<9xf32, #tpu.memory_space<smem>>
    %138 = vector.broadcast %137 : f32 to vector<1x128xf32>
    %139 = arith.mulf %129, %138 : vector<1x128xf32>
    %140 = arith.addf %136, %139 : vector<1x128xf32>
    %c0_32 = arith.constant 0 : index
    %141 = memref.load %arg7[%c0_32] : memref<3xf32, #tpu.memory_space<smem>>
    %142 = vector.broadcast %141 : f32 to vector<1x128xf32>
    %143 = arith.addf %140, %142 : vector<1x128xf32>
    %c0_33 = arith.constant 0 : index
    %144 = arith.index_cast %3 : i32 to index
    %145 = vector.load %arg8[%c0_33, %144] : memref<8x128xf32, #tpu.memory_space<vmem>>, vector<1x128xf32>
    tpu.vector_store %arg8[%c0_33, %144], %143 {strides = array<i32>} : memref<8x128xf32, #tpu.memory_space<vmem>>, vector<1x128xf32>,
    %c1_34 = arith.constant 1 : index
    %146 = memref.load %arg6[%c1_34] : memref<9xf32, #tpu.memory_space<smem>>
    %147 = vector.broadcast %146 : f32 to vector<1x128xf32>
    %148 = arith.mulf %99, %147 : vector<1x128xf32>
    %c4_35 = arith.constant 4 : index
    %149 = memref.load %arg6[%c4_35] : memref<9xf32, #tpu.memory_space<smem>>
    %150 = vector.broadcast %149 : f32 to vector<1x128xf32>
    %151 = arith.mulf %114, %150 : vector<1x128xf32>
    %152 = arith.addf %148, %151 : vector<1x128xf32>
    %c7_36 = arith.constant 7 : index
    %153 = memref.load %arg6[%c7_36] : memref<9xf32, #tpu.memory_space<smem>>
    %154 = vector.broadcast %153 : f32 to vector<1x128xf32>
    %155 = arith.mulf %129, %154 : vector<1x128xf32>
    %156 = arith.addf %152, %155 : vector<1x128xf32>
    %c1_37 = arith.constant 1 : index
    %157 = memref.load %arg7[%c1_37] : memref<3xf32, #tpu.memory_space<smem>>
    %158 = vector.broadcast %157 : f32 to vector<1x128xf32>
    %159 = arith.addf %156, %158 : vector<1x128xf32>
    %c1_38 = arith.constant 1 : index
    %160 = arith.index_cast %3 : i32 to index
    %161 = vector.load %arg8[%c1_38, %160] : memref<8x128xf32, #tpu.memory_space<vmem>>, vector<1x128xf32>
    tpu.vector_store %arg8[%c1_38, %160], %159 {strides = array<i32>} : memref<8x128xf32, #tpu.memory_space<vmem>>, vector<1x128xf32>,
    %c2_39 = arith.constant 2 : index
    %162 = memref.load %arg6[%c2_39] : memref<9xf32, #tpu.memory_space<smem>>
    %163 = vector.broadcast %162 : f32 to vector<1x128xf32>
    %164 = arith.mulf %99, %163 : vector<1x128xf32>
    %c5_40 = arith.constant 5 : index
    %165 = memref.load %arg6[%c5_40] : memref<9xf32, #tpu.memory_space<smem>>
    %166 = vector.broadcast %165 : f32 to vector<1x128xf32>
    %167 = arith.mulf %114, %166 : vector<1x128xf32>
    %168 = arith.addf %164, %167 : vector<1x128xf32>
    %c8_41 = arith.constant 8 : index
    %169 = memref.load %arg6[%c8_41] : memref<9xf32, #tpu.memory_space<smem>>
    %170 = vector.broadcast %169 : f32 to vector<1x128xf32>
    %171 = arith.mulf %129, %170 : vector<1x128xf32>
    %172 = arith.addf %168, %171 : vector<1x128xf32>
    %c2_42 = arith.constant 2 : index
    %173 = memref.load %arg7[%c2_42] : memref<3xf32, #tpu.memory_space<smem>>
    %174 = vector.broadcast %173 : f32 to vector<1x128xf32>
    %175 = arith.addf %172, %174 : vector<1x128xf32>
    %c2_43 = arith.constant 2 : index
    %176 = arith.index_cast %3 : i32 to index
    %177 = vector.load %arg8[%c2_43, %176] : memref<8x128xf32, #tpu.memory_space<vmem>>, vector<1x128xf32>
    tpu.vector_store %arg8[%c2_43, %176], %175 {strides = array<i32>} : memref<8x128xf32, #tpu.memory_space<vmem>>, vector<1x128xf32>,
    %c1_i32 = arith.constant 1 : i32
    return
  }
  func.func @transform_0(%arg0: i32) -> (i32, i32) {
    %c0_i32 = arith.constant 0 : i32
    %c0_i32_0 = arith.constant 0 : i32
    return %c0_i32, %arg0 : i32, i32
  }
  func.func @transform_1(%arg0: i32) -> i32 {
    %c0_i32 = arith.constant 0 : i32
    %c0_i32_0 = arith.constant 0 : i32
    return %c0_i32 : i32
  }
  func.func @transform_2(%arg0: i32) -> i32 {
    %c0_i32 = arith.constant 0 : i32
    %c0_i32_0 = arith.constant 0 : i32
    return %c0_i32 : i32
  }
  func.func @transform_3(%arg0: i32) -> i32 {
    %c0_i32 = arith.constant 0 : i32
    %c0_i32_0 = arith.constant 0 : i32
    return %c0_i32 : i32
  }
  func.func @transform_4(%arg0: i32) -> i32 {
    %c0_i32 = arith.constant 0 : i32
    %c0_i32_0 = arith.constant 0 : i32
    return %c0_i32 : i32
  }
  func.func @transform_5(%arg0: i32) -> i32 {
    %c0_i32 = arith.constant 0 : i32
    %c0_i32_0 = arith.constant 0 : i32
    return %c0_i32 : i32
  }
  func.func @transform_6(%arg0: i32) -> i32 {
    %c0_i32 = arith.constant 0 : i32
    %c0_i32_0 = arith.constant 0 : i32
    return %c0_i32 : i32
  }
  func.func @transform_7(%arg0: i32) -> (i32, i32) {
    %c0_i32 = arith.constant 0 : i32
    %c0_i32_0 = arith.constant 0 : i32
    return %c0_i32, %arg0 : i32, i32
  }
}

</mosaic_0001>

<bundles_post_ra>
// kernel: tpu_custom_call.1
= control target key start
LH: loop header
LB: loop body
LE: loop exit
PB: predicated region body
PF: predicated region fallthrough
CT: control target
= control target key end

     0   :  { %12 = vsyncpa [#allocation3], 0  ;;  %s581_s0 = inlined_call_operand.hbm [shape: f32[4,128], index: 0, kind: input, shape index: {}]   ;;  %s582_s1 = inlined_call_operand.vmem [shape: f32[12], index: 1, kind: input, shape index: {}]   ;;  %s583_s2 = inlined_call_operand.vmem [shape: f32[3], index: 2, kind: input, shape index: {}]   ;;  %s584_s3 = inlined_call_operand.vmem [shape: f32[9], index: 3, kind: input, shape index: {}]   ;;  %s585_s4 = inlined_call_operand.vmem [shape: f32[3], index: 4, kind: input, shape index: {}]   ;;  %s586_s5 = inlined_call_operand.vmem [shape: f32[9], index: 5, kind: input, shape index: {}]   ;;  %s587_s6 = inlined_call_operand.vmem [shape: f32[3], index: 6, kind: input, shape index: {}]   ;;  %s588_s7 = inlined_call_operand.hbm [shape: f32[8,128], index: 7, kind: output, shape index: {}]  }
   0x1   :  { %13 = vsyncpa [#allocation5], 0 }
   0x2   :  { %14 = vsyncpa [#allocation8], 0 }
   0x3   :  { %15 = vsyncpa [#allocation11], 0 }
   0x4   :  { %16 = vsyncpa [#allocation14], 0  ;;  %s44_s26 = sshll.u32 %s583_s2, 4  ;;  %s45_s26 = int_to_ptr.vmem [resolvable:$true] %s44_s26 }
   0x5   :  { %17 = vsyncpa [#allocation4], 0  ;;  %s64_s29 = sshll.u32 %s585_s4, 4  ;;  %s335_s30 = scalar_lea.vmem %s45_s26, 16  ;;  %s65_s29 = int_to_ptr.vmem [resolvable:$true] %s64_s29 }
   0x6   :  { %p336_p0 = scmp.ne.s32.totalorder %s45_s26, %s335_s30  ;;  %p340_p1 = scmp.lt.s32.totalorder %s45_s26, %s45_s26 }
   0x7   :  { %p341_p2 = scmp.lt.s32.totalorder %s335_s30, %s335_s30 }
   0x9   :  { %p342_p3 = por %p341_p2, %p340_p1 }
   0xb   :  { %p343_p4 = pnand %p342_p3, %p336_p0 }
   0xd   :  { %346 = shalt.err (!%p343_p4)
}
   0xe   :  { %s463_s8 = smov [#allocation7]   ;;  %s347_s9 = scalar_lea.vmem %s65_s29, 16 }
   0xf   :  { %47 = dma.vmem_to_smem %s45_s26, 16, %s463_s8, [#allocation8]  }
  0x10   :  { %p348_p5 = scmp.ne.s32.totalorder %s65_s29, %s347_s9  ;;  %p352_p6 = scmp.lt.s32.totalorder %s65_s29, %s65_s29 }
  0x11   :  { %p353_p7 = scmp.lt.s32.totalorder %s347_s9, %s347_s9 }
  0x13   :  { %p354_p8 = por %p353_p7, %p352_p6 }
  0x15   :  { %p355_p9 = pnand %p354_p8, %p348_p5 }
  0x17   :  { %358 = shalt.err (!%p355_p9)
}
  0x18   :  { %s464_s2 = smov [#allocation10]   ;;  %s34_s11 = sshll.u32 %s582_s1, 4  ;;  %s35_s11 = int_to_ptr.vmem [resolvable:$true] %s34_s11 }
  0x19   :  { %67 = dma.vmem_to_smem %s65_s29, 16, %s464_s2, [#allocation11]  }
  0x1a   :  { %s465_s12 = smov [#allocation2]   ;;  %s359_s16 = scalar_lea.hbm %s581_s0, 64 }
  0x1b   :  { %s24_s13 = sshll.u32 %s465_s12, 4  ;;  %p360_p10 = scmp.ne.s32.totalorder %s581_s0, %s359_s16  ;;  %s25_s13 = int_to_ptr.vmem [resolvable:$true] %s24_s13 }
  0x1c   :  { %p363_p11 = scmp.lt.u32.totalorder %s359_s16, %s581_s0 }
  0x1e   :  { %p365_p12 = pnand %p363_p11, %p360_p10 }
  0x20   :  { %368 = shalt.err (!%p365_p12)
}
  0x21   :  { %s369_s21 = scalar_lea.vmem %s25_s13, 64  ;;  %p374_p0 = scmp.lt.s32.totalorder %s25_s13, %s25_s13 }
  0x22   :  { %p370_p13 = scmp.ne.s32.totalorder %s25_s13, %s369_s21  ;;  %p375_p1 = scmp.lt.s32.totalorder %s369_s21, %s369_s21 }
  0x24   :  { %p376_p2 = por %p375_p1, %p374_p0 }
  0x26   :  { %p377_p3 = pnand %p376_p2, %p370_p13 }
  0x28   :  { %380 = shalt.err (!%p377_p3)
}
  0x29   :  { %27 = dma.hbm_to_vmem [thread:$0]  %s581_s0, 64, %s25_s13, [#allocation3]  }
  0x2a   :  { %s381_s23 = scalar_lea.vmem %s35_s11, 16  ;;  %p386_p5 = scmp.lt.s32.totalorder %s35_s11, %s35_s11 }
  0x2b   :  { %p382_p4 = scmp.ne.s32.totalorder %s35_s11, %s381_s23  ;;  %p387_p6 = scmp.lt.s32.totalorder %s381_s23, %s381_s23 }
  0x2d   :  { %p388_p7 = por %p387_p6, %p386_p5 }
  0x2f   :  { %p389_p8 = pnand %p388_p7, %p382_p4 }
  0x31   :  { %392 = shalt.err (!%p389_p8)
}
  0x32   :  { %s466_s24 = smov [#allocation6]   ;;  %s54_s27 = sshll.u32 %s584_s3, 4  ;;  %s55_s27 = int_to_ptr.vmem [resolvable:$true] %s54_s27 }
  0x33   :  { %37 = dma.vmem_to_smem %s35_s11, 16, %s466_s24, [#allocation5]  }
  0x34   :  { %s74_s30 = sshll.u32 %s586_s5, 4  ;;  %s393_s8 = scalar_lea.vmem %s55_s27, 16  ;;  %s75_s30 = int_to_ptr.vmem [resolvable:$true] %s74_s30 }
  0x35   :  { %p394_p9 = scmp.ne.s32.totalorder %s55_s27, %s393_s8  ;;  %p398_p10 = scmp.lt.s32.totalorder %s55_s27, %s55_s27 }
  0x36   :  { %p399_p11 = scmp.lt.s32.totalorder %s393_s8, %s393_s8 }
  0x38   :  { %p400_p12 = por %p399_p11, %p398_p10 }
  0x3a   :  { %p401_p13 = pnand %p400_p12, %p394_p9 }
  0x3c   :  { %404 = shalt.err (!%p401_p13)
}
  0x3d   :  { %s467_s0 = smov [#allocation9]   ;;  %s405_s9 = scalar_lea.vmem %s75_s30, 16 }
  0x3e   :  { %57 = dma.vmem_to_smem %s55_s27, 16, %s467_s0, [#allocation8]  }
  0x3f   :  { %p406_p0 = scmp.ne.s32.totalorder %s75_s30, %s405_s9  ;;  %p410_p1 = scmp.lt.s32.totalorder %s75_s30, %s75_s30 }
  0x40   :  { %p411_p2 = scmp.lt.s32.totalorder %s405_s9, %s405_s9 }
  0x42   :  { %p412_p3 = por %p411_p2, %p410_p1 }
  0x44   :  { %p413_p4 = pnand %p412_p3, %p406_p0 }
  0x46   :  { %416 = shalt.err (!%p413_p4)
}
  0x47   :  { %s468_s3 = smov [#allocation12]   ;;  %s84_s4 = sshll.u32 %s587_s6, 4  ;;  %s85_s4 = int_to_ptr.vmem [resolvable:$true] %s84_s4 }
  0x48   :  { %77 = dma.vmem_to_smem %s75_s30, 16, %s468_s3, [#allocation11]  }
  0x49   :  { %s417_s10 = scalar_lea.vmem %s85_s4, 16  ;;  %p422_p6 = scmp.lt.s32.totalorder %s85_s4, %s85_s4 }
  0x4a   :  { %p418_p5 = scmp.ne.s32.totalorder %s85_s4, %s417_s10  ;;  %p423_p7 = scmp.lt.s32.totalorder %s417_s10, %s417_s10 }
  0x4c   :  { %p424_p8 = por %p423_p7, %p422_p6 }
  0x4e   :  { %p425_p9 = pnand %p424_p8, %p418_p5 }
  0x50   :  { %428 = shalt.err (!%p425_p9)
}
  0x51   :  { %s469_s11 = smov [#allocation13]  }
  0x52   :  { %87 = dma.vmem_to_smem %s85_s4, 16, %s469_s11, [#allocation14]  }
  0x53   :  { %451 = dma.done.wait [#allocation3], 64  }
  0x54   :  { %452 = vsyncadd [#allocation3], 4294967232 }
  0x55   :  { %453 = dma.done.wait [#allocation5], 16  }
  0x56   :  { %454 = vsyncadd [#allocation5], 4294967280 }
  0x57   :  { %455 = dma.done.wait [#allocation8], 32  }
  0x58   :  { %456 = vsyncadd [#allocation8], 4294967264 }
  0x59   :  { %457 = dma.done.wait [#allocation11], 32  }
  0x5a   :  { %458 = vsyncadd [#allocation11], 4294967264 }
  0x5b   :  { %459 = dma.done.wait [#allocation14], 16  }
  0x5c   :  { %460 = vsyncadd [#allocation14], 4294967280 }
  0x5d   :  { %109 = sfence }
  0x5e   :  { %s112_s6 = sld [smem:[#allocation6]]  ;;  %v470_v0 = vmov 0.0   ;;  %s281_s12 = sld [smem:[#allocation6 + $0x3]]  ;;  %v111_v1 = vld [vmem:[#allocation2] sm:$0x1] }
  0x5f   :  { %110 = vst [vmem:[#allocation15 + $0x3] sm:$0x1f] %v470_v0  ;;  %s282_s13 = sld [smem:[#allocation6 + $0x6]]  ;;  %s283_s14 = sld [smem:[#allocation6 + $0x9]]  ;;  %v115_v2 = vld [vmem:[#allocation2 + $0x1] sm:$0x1] }
  0x60   :  { %s542_s15 = sld [smem:[#allocation7]]  ;;  %s284_s16 = sld [smem:[#allocation6 + $0x1]]  ;;  %v120_v3 = vld [vmem:[#allocation2 + $0x2] sm:$0x1]  ;;  %v125_v5 = vld [vmem:[#allocation2 + $0x3] sm:$0x1] }
  0x61   :  { %s285_s17 = sld [smem:[#allocation6 + $0x4]]  ;;  %s286_s18 = sld [smem:[#allocation6 + $0x7]] }
  0x62   :  { %s287_s19 = sld [smem:[#allocation6 + $0xa]]  ;;  %s290_s21 = sld [smem:[#allocation6 + $0x5]] }
  0x63   :  { %s289_s20 = sld [smem:[#allocation6 + $0x2]]  ;;  %s291_s1 = sld [smem:[#allocation6 + $0x8]] }
  0x64   :  { %v113_v4 = vstv %s112_s6  ;;  %v117_v7 = vstv %s281_s12  ;;  %s292_s22 = sld [smem:[#allocation6 + $0xb]]  ;;  %s544_s23 = sld [smem:[#allocation7 + $0x1]] }
  0x65   :  { %v114_v6 = vmul.f32 %v113_v4, %v111_v1  ;;  %v118_v8 = vmul.f32 %v117_v7, %v115_v2  ;;  %v122_v9 = vstv %s282_s13  ;;  %v127_v10 = vstv %s283_s14  ;;  %s546_s24 = sld [smem:[#allocation7 + $0x2]]  ;;  %s172_s25 = sld [smem:[#allocation9]] }
  0x66   :  { %v123_v11 = vmul.f32 %v122_v9, %v120_v3  ;;  %v128_v12 = vmul.f32 %v127_v10, %v125_v5  ;;  %v135_v13 = vstv %s284_s16  ;;  %v131_v18 = vstv %s542_s15  ;;  %s296_s26 = sld [smem:[#allocation9 + $0x1]]  ;;  %s294_s27 = sld [smem:[#allocation9 + $0x3]] }
  0x67   :  { %v119_v14 = vadd.f32 %v118_v8, %v114_v6  ;;  %v136_v15 = vmul.f32 %v135_v13, %v111_v1  ;;  %v138_v16 = vstv %s285_s17  ;;  %v142_v17 = vstv %s286_s18  ;;  %s300_s28 = sld [smem:[#allocation9 + $0x2]]  ;;  %s297_s29 = sld [smem:[#allocation9 + $0x4]] }
  0x68   :  { %v139_v19 = vmul.f32 %v138_v16, %v115_v2  ;;  %v143_v20 = vmul.f32 %v142_v17, %v120_v3  ;;  %v146_v21 = vstv %s287_s19  ;;  %v157_v25 = vstv %s290_s21  ;;  %s301_s30 = sld [smem:[#allocation9 + $0x5]]  ;;  %s295_s8 = sld [smem:[#allocation9 + $0x6]] }
  0x69   :  { %v124_v22 = vadd.f32 %v123_v11, %v119_v14  ;;  %v147_v23 = vmul.f32 %v146_v21, %v125_v5  ;;  %v154_v24 = vstv %s289_s20  ;;  %v158_v28 = vmul.f32 %v157_v25, %v115_v2  ;;  %s298_s0 = sld [smem:[#allocation9 + $0x7]]  ;;  %s302_s9 = sld [smem:[#allocation9 + $0x8]] }
  0x6a   :  { %v140_v26 = vadd.f32 %v139_v19, %v136_v15  ;;  %v155_v27 = vmul.f32 %v154_v24, %v111_v1  ;;  %v161_v29 = vstv %s291_s1  ;;  %v165_v32 = vstv %s292_s22  ;;  %s551_s3 = sld [smem:[#allocation10]]  ;;  %s553_s5 = sld [smem:[#allocation10 + $0x1]] }
  0x6b   :  { %v129_v30 = vadd.f32 %v128_v12, %v124_v22  ;;  %v162_v31 = vmul.f32 %v161_v29, %v120_v3  ;;  %v166_v35 = vmul.f32 %v165_v32, %v125_v5  ;;  %v150_v37 = vstv %s544_s23  ;;  %s303_s2 = sld [smem:[#allocation10 + $0x2]]  ;;  %s217_s4 = sld [smem:[#allocation12]] }
  0x6c   :  { %v144_v33 = vadd.f32 %v143_v20, %v140_v26  ;;  %v159_v34 = vadd.f32 %v158_v28, %v155_v27  ;;  %v169_v40 = vstv %s546_s24  ;;  %v173_v44 = vstv %s172_s25  ;;  %s304_s10 = sld [smem:[#allocation12 + $0x3]]  ;;  %s557_s11 = sld [smem:[#allocation12 + $0x6]] }
  0x6d   :  { %v132_v36 = vadd.f32 %v131_v18, %v129_v30  ;;  %v188_v45 = vstv %s296_s26  ;;  %v203_v47 = vstv %s300_s28  ;;  %v176_v48 = vstv %s294_s27  ;;  %s306_s6 = sld [smem:[#allocation12 + $0x1]]  ;;  %s310_s12 = sld [smem:[#allocation12 + $0x2]] }
  0x6e   :  { %v148_v38 = vadd.f32 %v147_v23, %v144_v33  ;;  %v163_v39 = vadd.f32 %v162_v31, %v159_v34  ;;  %v191_v49 = vstv %s297_s29  ;;  %v206_v50 = vstv %s301_s30  ;;  %s307_s13 = sld [smem:[#allocation12 + $0x4]]  ;;  %s311_s14 = sld [smem:[#allocation12 + $0x5]] }
  0x6f   :  { %323 = vtanh.f32 %v132_v36  ;;  %v180_v54 = vstv %s295_s8  ;;  %v195_v55 = vstv %s298_s0  ;;  %v210_v60 = vstv %s302_s9  ;;  %s308_s15 = sld [smem:[#allocation12 + $0x7]]  ;;  %s312_s16 = sld [smem:[#allocation12 + $0x8]] }
  0x70   :  { %v151_v41 = vadd.f32 %v150_v37, %v148_v38  ;;  %v167_v42 = vadd.f32 %v166_v35, %v163_v39  ;;  %v184_v2 = vstv %s551_s3  ;;  %v199_v3 = vstv %s553_s5  ;;  %s559_s17 = sld [smem:[#allocation13]]  ;;  %s561_s18 = sld [smem:[#allocation13 + $0x1]] }
  0x71   :  { %v214_v8 = vstv %s303_s2  ;;  %s563_s19 = sld [smem:[#allocation13 + $0x2]]  ;;  %v218_v13 = vstv %s217_s4  ;;  %s471_s20 = smov [#allocation15]  }
  0x72   :  { %325 = vtanh.f32 %v151_v41  ;;  %v170_v43 = vadd.f32 %v169_v40, %v167_v42  ;;  %v221_v16 = vstv %s304_s10  ;;  %v225_v20 = vstv %s557_s11  ;;  %s268_s21 = sshll.u32 %s471_s20, 4  ;;  %s269_s21 = int_to_ptr.vmem [resolvable:$true] %s268_s21 }
  0x73   :  { %v233_v14 = vstv %s306_s6  ;;  %v248_v15 = vstv %s310_s12  ;;  %s429_s1 = scalar_lea.vmem %s269_s21, 128  ;;  %p434_p11 = scmp.lt.s32.totalorder %s269_s21, %s269_s21 }
  0x74   :  { %327 = vtanh.f32 %v170_v43  ;;  %v236_v17 = vstv %s307_s13  ;;  %v251_v18 = vstv %s311_s14  ;;  %p430_p10 = scmp.ne.s32.totalorder %s269_s21, %s429_s1  ;;  %p435_p12 = scmp.lt.s32.totalorder %s429_s1, %s429_s1 }
  0x75   :  { %v240_v21 = vstv %s308_s15  ;;  %v255_v22 = vstv %s312_s16 }
  0x76   :  { %v229_v37 = vstv %s559_s17  ;;  %v244_v38 = vstv %s561_s18  ;;  %p436_p13 = por %p435_p12, %p434_p11 }
  0x77   :  { %v259_v39 = vstv %s563_s19 }
  0x78   :  { %p437_p0 = pnand %p436_p13, %p430_p10 }
  0x79   :  { %v324_v46 = vpop.eup %323 }
  0x7a   :  { %v174_v51 = vmul.f32 %v324_v46, %v173_v44  ;;  %v189_v52 = vmul.f32 %v324_v46, %v188_v45  ;;  %v204_v56 = vmul.f32 %v324_v46, %v203_v47 }
  0x7c   :  { %v326_v53 = vpop.eup %325 }
  0x7d   :  { %v177_v57 = vmul.f32 %v326_v53, %v176_v48  ;;  %v192_v58 = vmul.f32 %v326_v53, %v191_v49  ;;  %v207_v59 = vmul.f32 %v326_v53, %v206_v50 }
  0x7e   :  { %v328_v61 = vpop.eup %327 }
  0x7f   :  { %v178_v62 = vadd.f32 %v177_v57, %v174_v51  ;;  %v181_v63 = vmul.f32 %v328_v61, %v180_v54  ;;  %v193_v0 = vadd.f32 %v192_v58, %v189_v52  ;;  %v196_v1 = vmul.f32 %v328_v61, %v195_v55 }
  0x80   :  { %v208_v4 = vadd.f32 %v207_v59, %v204_v56  ;;  %v211_v5 = vmul.f32 %v328_v61, %v210_v60 }
  0x81   :  { %v182_v6 = vadd.f32 %v181_v63, %v178_v62  ;;  %v197_v7 = vadd.f32 %v196_v1, %v193_v0 }
  0x82   :  { %v212_v9 = vadd.f32 %v211_v5, %v208_v4 }
  0x83   :  { %v185_v10 = vadd.f32 %v184_v2, %v182_v6  ;;  %v200_v11 = vadd.f32 %v199_v3, %v197_v7 }
  0x84   :  { %v215_v12 = vadd.f32 %v214_v8, %v212_v9 }
  0x85   :  { %329 = vtanh.f32 %v185_v10 }
  0x86   :  { %331 = vtanh.f32 %v200_v11 }
  0x87   :  { %333 = vtanh.f32 %v215_v12 }
  0x8f   :  { %v330_v19 = vpop.eup %329 }
  0x90   :  { %v332_v23 = vpop.eup %331  ;;  %v219_v24 = vmul.f32 %v330_v19, %v218_v13  ;;  %v234_v25 = vmul.f32 %v330_v19, %v233_v14  ;;  %v249_v26 = vmul.f32 %v330_v19, %v248_v15 }
  0x91   :  { %v334_v27 = vpop.eup %333  ;;  %v222_v28 = vmul.f32 %v332_v23, %v221_v16  ;;  %v237_v29 = vmul.f32 %v332_v23, %v236_v17  ;;  %v252_v30 = vmul.f32 %v332_v23, %v251_v18 }
  0x92   :  { %v226_v31 = vmul.f32 %v334_v27, %v225_v20  ;;  %v241_v32 = vmul.f32 %v334_v27, %v240_v21  ;;  %v256_v33 = vmul.f32 %v334_v27, %v255_v22 }
  0x93   :  { %v223_v34 = vadd.f32 %v222_v28, %v219_v24  ;;  %v238_v35 = vadd.f32 %v237_v29, %v234_v25  ;;  %v253_v36 = vadd.f32 %v252_v30, %v249_v26 }
  0x95   :  { %v227_v40 = vadd.f32 %v226_v31, %v223_v34  ;;  %v242_v41 = vadd.f32 %v241_v32, %v238_v35  ;;  %v257_v42 = vadd.f32 %v256_v33, %v253_v36 }
  0x97   :  { %v230_v43 = vadd.f32 %v229_v37, %v227_v40  ;;  %v245_v44 = vadd.f32 %v244_v38, %v242_v41  ;;  %v260_v45 = vadd.f32 %v259_v39, %v257_v42 }
  0x99   :  { %231 = vst [vmem:[#allocation15] sm:$0x1] %v230_v43  ;;  %246 = vst [vmem:[#allocation15 + $0x1] sm:$0x1] %v245_v44 }
  0x9a   :  { %261 = vst [vmem:[#allocation15 + $0x2] sm:$0x1] %v260_v45 }
  0x9b   :  { %440 = shalt.err (!%p437_p0)
}
  0x9c   :  { %s441_s24 = scalar_lea.hbm %s588_s7, 128 }
  0x9d   :  { %p442_p1 = scmp.ne.s32.totalorder %s588_s7, %s441_s24  ;;  %p445_p2 = scmp.lt.u32.totalorder %s441_s24, %s588_s7 }
  0x9f   :  { %p447_p3 = pnand %p445_p2, %p442_p1 }
  0xa1   :  { %450 = shalt.err (!%p447_p3)
}
  0xa2   :  { %271 = dma.vmem_to_hbm [thread:$0]  %s269_s21, 128, %s588_s7, [#allocation4]  }
  0xa3   :  { %461 = dma.done.wait [#allocation4], 128  }
  0xa4   :  { %462 = vsyncadd [#allocation4], 4294967168 }
  0xa5   :  { %275 = vsyncpa [#allocation3], 1 }
  0xa6   :  { %276 = vsyncpa [#allocation4], 1 }
  0xa7   :  { %277 = vsyncpa [#allocation5], 1 }
  0xa8   :  { %278 = vsyncpa [#allocation8], 1 }
  0xa9   :  { %279 = vsyncpa [#allocation11], 1 }
  0xaa   :  { %280 = vsyncpa [#allocation14], 1 }

</bundles_post_ra>
